<compile_context>
chip_gen: v7x
topology: tpu7x:2x2x1
jax: 0.10.0
libtpu: 0.0.40
codegen_flags: <defaults>
</compile_context>

<pallas_src>
import functools

import jax
import jax.numpy as jnp
from jax.experimental import pallas as pl
from jax.experimental.pallas import tpu as pltpu


def _make_kernel(scale: float, offset: float, compute_dtype):
    """Kernel factory: y = max(x * scale + offset, 0), constants baked in."""

    def kernel(x_ref, o_ref):
        x = x_ref[...].astype(compute_dtype)
        # scale/offset are Python floats (weakly typed) -> no dtype promotion.
        y = x * scale + offset
        o_ref[...] = jnp.maximum(y, 0.0).astype(o_ref.dtype)

    return kernel


def _default_block_bytes() -> int:
    """~4 MiB blocks on big-VMEM chips (v6e/v7x/v5p/v4), ~2 MiB on v5e/older."""
    try:
        kind = jax.devices()[0].device_kind.lower()
    except Exception:  # pragma: no cover - e.g. interpret mode with no TPU
        kind = ""
    small_vmem = any(t in kind for t in ("v5 lite", "v5lite", "v5e", "v2", "v3"))
    big_vmem = any(t in kind for t in ("v6", "v7", "v5p", "v4"))
    if small_vmem or not big_vmem:
        return 2 * 1024 * 1024
    return 4 * 1024 * 1024


def acc_rescaler(x: jnp.ndarray, std: float, mean: float, *,
                 compute_dtype=jnp.float32,
                 block_bytes: int | None = None,
                 max_lane_width: int = 2048) -> jnp.ndarray:
    """y = clamp(100*x*std + mean, 0) elementwise, single-pass pipelined kernel."""
    orig_shape = x.shape
    dtype = x.dtype
    n = x.size
    if n == 0:
        return x

    if block_bytes is None:
        block_bytes = _default_block_bytes()
    itemsize = jnp.dtype(dtype).itemsize

    # Fold 100.0 * std host-side (scalar constant folding, not a tensor pre-scale).
    scale = float(100.0 * std)
    offset = float(mean)
    kernel = _make_kernel(scale, offset, compute_dtype)

    cost = pl.CostEstimate(
        flops=3 * n,            # mul, add, max per element
        transcendentals=0,
        bytes_accessed=2 * n * itemsize,
    )
    cparams = pltpu.CompilerParams(dimension_semantics=("parallel",))

    if n % 128 == 0:
        # -------- Lane-aligned path: zero-copy (rows, W) view, W | n, 128 | W.
        units = n // 128
        max_k = max(1, max_lane_width // 128)
        k = 1
        for cand in range(min(max_k, units), 0, -1):
            if units % cand == 0:
                k = cand
                break
        W = 128 * k
        rows = n // W
        x2d = x.reshape(rows, W)

        # Row tile from the per-generation byte budget (multiple of 8).
        cap_rows = max(8, (block_bytes // (W * itemsize)) // 8 * 8)
        if rows <= 8:
            block_r = rows                      # full extent (tiny input)
        elif rows <= cap_rows:
            # Split into >= 2 tiles so a v7x megacore can use both TensorCores.
            half = (rows + 1) // 2
            block_r = min(cap_rows, ((half + 7) // 8) * 8)
        else:
            block_r = cap_rows
        num_tiles = pl.cdiv(rows, block_r)

        out2d = pl.pallas_call(
            kernel,
            out_shape=jax.ShapeDtypeStruct((rows, W), dtype),
            grid=(num_tiles,),
            in_specs=[pl.BlockSpec((block_r, W), lambda i: (i, 0))],
            out_specs=pl.BlockSpec((block_r, W), lambda i: (i, 0)),
            compiler_params=cparams,
            cost_estimate=cost,
        )(x2d)
        return out2d.reshape(orig_shape)

    # -------- Misaligned path (n not a multiple of 128): zero-copy (1, n) view.
    # No pad / slice; Pallas masks the ragged edge.  (1, W) blocks use a single
    # sublane per vreg, so cap the block modestly; this path is only hit for
    # oddly-sized (typically tiny) accuracy tensors.
    x2d = x.reshape(1, n)
    max_block_w = 65536                          # elems, multiple of 128
    if n <= max_block_w:
        block_w = n                              # full extent -> any width OK
    else:
        block_w = max_block_w
    num_tiles = pl.cdiv(n, block_w)

    out2d = pl.pallas_call(
        kernel,
        out_shape=jax.ShapeDtypeStruct((1, n), dtype),
        grid=(num_tiles,),
        in_specs=[pl.BlockSpec((1, block_w), lambda i: (0, i))],
        out_specs=pl.BlockSpec((1, block_w), lambda i: (0, i)),
        compiler_params=cparams,
        cost_estimate=cost,
    )(x2d)
    return out2d.reshape(orig_shape)


def acc_rescaler_ref(x, std, mean):
    y = 100.0 * x.astype(jnp.float32) * std + mean
    return jnp.maximum(y, 0.0).astype(x.dtype)


if __name__ == "__main__":
    key = jax.random.PRNGKey(0)
    # Deterministic synthetic "dataset statistics".
    # TODO(synk): in the original module these come from torch.load(...) of a .pt file.
    std = 0.0123
    mean = 74.5

    # 1) Primary small input (lane-aligned path: n = 2048 -> zero-copy (1, 2048)).
    x = jax.random.normal(key, (2, 4, 16, 16), dtype=jnp.float32)
    y = jax.block_until_ready(acc_rescaler(x, std, mean))
    y_ref = acc_rescaler_ref(x, std, mean)
    assert y.shape == x.shape and y.dtype == x.dtype
    assert jnp.allclose(y, y_ref, atol=1e-5, rtol=1e-5)

    # 2) Odd-sized input (n = 1155, not a multiple of 128) -> pad-free (1, n) path.
    x2 = jax.random.normal(jax.random.PRNGKey(1), (3, 5, 7, 11), dtype=jnp.float32)
    y2 = jax.block_until_ready(acc_rescaler(x2, std, mean))
    y2_ref = acc_rescaler_ref(x2, std, mean)
    assert y2.shape == x2.shape and y2.dtype == x2.dtype
    assert jnp.allclose(y2, y2_ref, atol=1e-5, rtol=1e-5)

    # 3) Medium input exercising the multi-tile pipelined / megacore path
    #    (n = 196608 -> (96, 2048), grid >= 2).
    x3 = jax.random.normal(jax.random.PRNGKey(2), (4, 8, 64, 96), dtype=jnp.float32)
    y3 = jax.block_until_ready(acc_rescaler(x3, std, mean))
    y3_ref = acc_rescaler_ref(x3, std, mean)
    assert y3.shape == x3.shape and y3.dtype == x3.dtype
    assert jnp.allclose(y3, y3_ref, atol=1e-5, rtol=1e-5)

    # 4) bf16 input (output stays bf16; compute in f32 matches the torch promotion).
    x4 = jax.random.normal(jax.random.PRNGKey(3), (2, 3, 40, 40), dtype=jnp.bfloat16)
    y4 = jax.block_until_ready(acc_rescaler(x4, std, mean))
    y4_ref = acc_rescaler_ref(x4, std, mean)
    assert y4.shape == x4.shape and y4.dtype == x4.dtype
    assert jnp.allclose(y4.astype(jnp.float32), y4_ref.astype(jnp.float32),
                        atol=0.6, rtol=2e-2)

    print("KERNEL_OK")
</pallas_src>

<mosaic_0001>
module attributes {stable_mosaic.version = 11 : i64} {
  func.func @kernel(%arg0: i32, %arg1: memref<1x2048xf32, #tpu.memory_space<vmem>>, %arg2: memref<1x2048xf32, #tpu.memory_space<vmem>>) attributes {dimension_semantics = [#tpu.dimension_semantics<parallel>], iteration_bounds = array<i64: 1>, scalar_prefetch = 0 : i64, scratch_operands = 0 : i64, tpu.core_type = #tpu.core_type<tc>, window_params = [{transform_indices = @transform_0, window_bounds = array<i64: 1, 2048>}, {transform_indices = @transform_1, window_bounds = array<i64: 1, 2048>}]} {
    %c0 = arith.constant 0 : index
    %c0_0 = arith.constant 0 : index
    %0 = vector.load %arg1[%c0, %c0_0] : memref<1x2048xf32, #tpu.memory_space<vmem>>, vector<1x2048xf32>
    %cst = arith.constant 1.230000e+00 : f32
    %1 = vector.broadcast %cst : f32 to vector<1x2048xf32>
    %2 = arith.mulf %0, %1 : vector<1x2048xf32>
    %cst_1 = arith.constant 7.450000e+01 : f32
    %3 = vector.broadcast %cst_1 : f32 to vector<1x2048xf32>
    %4 = arith.addf %2, %3 : vector<1x2048xf32>
    %cst_2 = arith.constant 0.000000e+00 : f32
    %5 = vector.broadcast %cst_2 : f32 to vector<1x2048xf32>
    %6 = arith.maximumf %4, %5 : vector<1x2048xf32>
    %c0_3 = arith.constant 0 : index
    %c0_4 = arith.constant 0 : index
    %7 = vector.load %arg2[%c0_3, %c0_4] : memref<1x2048xf32, #tpu.memory_space<vmem>>, vector<1x2048xf32>
    tpu.vector_store %arg2[%c0_3, %c0_4], %6 {strides = array<i32>} : memref<1x2048xf32, #tpu.memory_space<vmem>>, vector<1x2048xf32>,
    return
  }
  func.func @transform_0(%arg0: i32) -> (i32, i32) {
    %c0_i32 = arith.constant 0 : i32
    %c0_i32_0 = arith.constant 0 : i32
    return %arg0, %c0_i32 : i32, i32
  }
  func.func @transform_1(%arg0: i32) -> (i32, i32) {
    %c0_i32 = arith.constant 0 : i32
    %c0_i32_0 = arith.constant 0 : i32
    return %arg0, %c0_i32 : i32, i32
  }
}

</mosaic_0001>

<bundles_post_ra>
// kernel: tpu_custom_call.1
= control target key start
LH: loop header
LB: loop body
LE: loop exit
PB: predicated region body
PF: predicated region fallthrough
CT: control target
= control target key end

     0   :  { %6 = vsyncpa [#allocation3], 0  ;;  %s132_s0 = inlined_call_operand.hbm [shape: f32[1,2048], index: 0, kind: input, shape index: {}]   ;;  %s133_s1 = inlined_call_operand.hbm [shape: f32[1,2048], index: 1, kind: output, shape index: {}]  }
   0x1   :  { %7 = vsyncpa [#allocation4], 0  ;;  %s96_s6 = smov [#allocation2]   ;;  %s48_s10 = scalar_lea.hbm %s132_s0, 256 }
   0x2   :  { %s14_s7 = sshll.u32 %s96_s6, 4  ;;  %p49_p0 = scmp.ne.s32.totalorder %s132_s0, %s48_s10  ;;  %s15_s7 = int_to_ptr.vmem [resolvable:$true] %s14_s7 }
   0x3   :  { %p52_p1 = scmp.lt.u32.totalorder %s48_s10, %s132_s0 }
   0x5   :  { %p54_p2 = pnand %p52_p1, %p49_p0 }
   0x7   :  { %57 = shalt.err (!%p54_p2)
}
   0x8   :  { %s58_s15 = scalar_lea.vmem %s15_s7, 256  ;;  %p63_p4 = scmp.lt.s32.totalorder %s15_s7, %s15_s7 }
   0x9   :  { %p59_p3 = scmp.ne.s32.totalorder %s15_s7, %s58_s15  ;;  %p64_p5 = scmp.lt.s32.totalorder %s58_s15, %s58_s15 }
   0xb   :  { %p65_p6 = por %p64_p5, %p63_p4 }
   0xd   :  { %p66_p7 = pnand %p65_p6, %p59_p3 }
   0xf   :  { %69 = shalt.err (!%p66_p7)
}
  0x10   :  { %17 = dma.hbm_to_vmem [thread:$0]  %s132_s0, 256, %s15_s7, [#allocation3]  }
  0x11   :  { %92 = dma.done.wait [#allocation3], 256  }
  0x12   :  { %93 = vsyncadd [#allocation3], 4294967040  ;;  %v21_v0 = vld [vmem:[#allocation2] sm:$0xff]  ;;  %v22_v1 = vld [vmem:[#allocation2 + $0x8] sm:$0xff]  ;;  %s97_s18 = smov [#allocation5]  }
  0x13   :  { %v23_v2 = vmul.f32 1.23, %v21_v0  ;;  %v24_v3 = vmul.f32 1.23, %v22_v1  ;;  %s37_s19 = sshll.u32 %s97_s18, 4  ;;  %s38_s19 = int_to_ptr.vmem [resolvable:$true] %s37_s19 }
  0x14   :  { %s70_s20 = scalar_lea.vmem %s38_s19, 256  ;;  %p75_p9 = scmp.lt.s32.totalorder %s38_s19, %s38_s19 }
  0x15   :  { %v25_v4 = vadd.f32 74.5, %v23_v2  ;;  %v26_v5 = vadd.f32 74.5, %v24_v3  ;;  %p71_p8 = scmp.ne.s32.totalorder %s38_s19, %s70_s20  ;;  %p76_p10 = scmp.lt.s32.totalorder %s70_s20, %s70_s20 }
  0x17   :  { %v27_v6 = vmax.f32 %v25_v4, 0.0  ;;  %v28_v7 = vmax.f32 %v26_v5, 0.0  ;;  %p77_p11 = por %p76_p10, %p75_p9 }
  0x19   :  { %29 = vst [vmem:[#allocation5] sm:$0xff] %v27_v6  ;;  %30 = vst [vmem:[#allocation5 + $0x8] sm:$0xff] %v28_v7  ;;  %p78_p12 = pnand %p77_p11, %p71_p8 }
  0x1b   :  { %81 = shalt.err (!%p78_p12)
}
  0x1c   :  { %s82_s22 = scalar_lea.hbm %s133_s1, 256 }
  0x1d   :  { %p83_p13 = scmp.ne.s32.totalorder %s133_s1, %s82_s22  ;;  %p86_p0 = scmp.lt.u32.totalorder %s82_s22, %s133_s1 }
  0x1f   :  { %p88_p1 = pnand %p86_p0, %p83_p13 }
  0x21   :  { %91 = shalt.err (!%p88_p1)
}
  0x22   :  { %40 = dma.vmem_to_hbm [thread:$0]  %s38_s19, 256, %s133_s1, [#allocation4]  }
  0x23   :  { %94 = dma.done.wait [#allocation4], 256  }
  0x24   :  { %95 = vsyncadd [#allocation4], 4294967040 }
  0x25   :  { %44 = vsyncpa [#allocation3], 1 }
  0x26   :  { %45 = vsyncpa [#allocation4], 1 }

</bundles_post_ra>
